<compile_context>
chip_gen: v6e
topology: v6e:2x2x1
jax: 0.10.0
libtpu: 0.0.40
codegen_flags: <defaults>
</compile_context>

<pallas_src>
import functools
import math

import jax
import jax.numpy as jnp
from jax import lax
from jax.experimental import pallas as pl
from jax.experimental.pallas import tpu as pltpu


# ---------------- Pallas kernel ----------------

def _rotating_linear_kernel(xf_ref, nx_ref, wt_ref, bias_ref, phi_ref, m_ref,
                            acc_phi, acc_chi):
    # xf_ref:   (tb*r, tk)  x flattened over (batch, rotation) -> single MXU LHS
    # nx_ref:   (tb,   tk)  ||x||_2 over rotations (precomputed in the wrapper)
    # wt_ref:   (tk,   tn)  W^T tile (d_in x d_out)
    # bias_ref: (tb*r, tn)  rotation bias pre-tiled to match the flattened rows
    # phi_ref:  (tb*r, tn)  output phi (flattened rows, row = local_b*r + rot)
    # m_ref:    (tb,   tn)  output m_bind
    # acc_phi:  (tb*r, tn)  f32 accumulator for fw(x) partial sums over d_in tiles
    # acc_chi:  (tb,   tn)  f32 accumulator for chi partial sums over d_in tiles
    k = pl.program_id(2)
    nk = pl.num_programs(2)

    @pl.when(k == 0)
    def _init():
        acc_phi[...] = jnp.zeros_like(acc_phi)
        acc_chi[...] = jnp.zeros_like(acc_chi)

    w = wt_ref[...]
    # One flattened MXU matmul with M = tb*r, plus a second small-M matmul that reuses
    # the already-staged W tile for chi.  All accumulation is in f32.
    acc_phi[...] += jnp.dot(xf_ref[...], w, preferred_element_type=jnp.float32)
    acc_chi[...] += jnp.dot(nx_ref[...], w, preferred_element_type=jnp.float32)

    @pl.when(k == nk - 1)
    def _finalize():
        tb = m_ref.shape[0]
        r = phi_ref.shape[0] // tb

        phi = acc_phi[...] + bias_ref[...].astype(jnp.float32)        # (tb*r, tn) f32
        phi_ref[...] = phi.astype(phi_ref.dtype)

        # Stash the biased phi back into the f32 scratch so the per-rotation rows can
        # be read with cheap static strided sublane loads (row = local_b*r + rot).
        acc_phi[...] = phi
        nsq = None
        for rr in range(r):                                            # r small & static
            p = acc_phi[pl.ds(rr, tb, stride=r), :]                    # (tb, tn)
            nsq = p * p if nsq is None else nsq + p * p
        norm_phi = jnp.sqrt(nsq)                                        # (tb, tn)
        m_ref[...] = (0.5 * norm_phi + 0.5 * acc_chi[...]).astype(m_ref.dtype)


# ---------------- wrapper ----------------

def _ceil_to(v, m):
    return -(-v // m) * m


def _vmem_limit_bytes():
    """Per-generation VMEM budget: v4/v5e/v6e have 128 MiB physical, v7x only 64 MiB."""
    try:
        kind = jax.devices()[0].device_kind.lower()
    except Exception:
        return None
    if any(t in kind for t in ("v4", "v5", "v6")):
        return 96 * 1024 * 1024
    if "v7" in kind:
        return 48 * 1024 * 1024
    return None


def rotating_linear_forward(x, weight, rotation_bias, *,
                            block_b=None, block_n=None, block_k=None):
    """x: (b, r, d_in); weight: (d_out, d_in) (PyTorch nn.Linear layout, bias=False);
    rotation_bias: (1, r, d_out).  Returns (m_bind, phi) like the PyTorch module."""
    b, r, d_in = x.shape
    d_out, d_in_w = weight.shape
    assert d_in_w == d_in
    assert rotation_bias.shape == (1, r, d_out)
    out_dtype = x.dtype

    # ||x||_2 over the rotation dim, hoisted out of the kernel: the extra HBM stream
    # is only b*d_in elements and it avoids recomputing the norm for every d_out tile
    # / holding a (tb, tk) f32 temporary live across the MXU loop.
    xf32 = x.astype(jnp.float32)
    norm_x = jnp.sqrt(jnp.sum(xf32 * xf32, axis=1)).astype(x.dtype)    # (b, d_in)

    # ---- tile selection: full dims when small, large 128-granular tiles otherwise ----
    auto_b, auto_n = block_b is None, block_n is None
    if block_k is None:
        block_k = d_in if d_in <= 1024 else 1024
    if block_n is None:
        block_n = d_out if d_out <= 512 else 512
    if block_b is None:
        block_b = b if b <= 128 else 128
    # v7x megacore: make sure the "parallel" axes provide >= 2 tiles so both
    # TensorCores get work (neutral on single-TC v5e/v6e).
    if (auto_b or auto_n) and (-(-b // block_b)) * (-(-d_out // block_n)) == 1:
        if auto_n and block_n >= 256 and block_n % 256 == 0:
            block_n //= 2
        elif auto_b and block_b >= 16 and block_b % 16 == 0:
            block_b //= 2
    assert block_k == d_in or block_k % 128 == 0
    assert block_n == d_out or block_n % 128 == 0
    assert block_b == b or block_b % 8 == 0

    k_pad = d_in if block_k == d_in else _ceil_to(d_in, block_k)
    n_pad = d_out if block_n == d_out else _ceil_to(d_out, block_n)
    b_pad = b if block_b == b else _ceil_to(b, block_b)

    # Flatten (batch, rotation) into the matmul M dimension (free, row-major reshape).
    x2 = x.reshape(b * r, d_in)
    wt = weight.T                                                      # (d_in, d_out)
    bias2d = rotation_bias.reshape(r, d_out)

    # NOTE: in a real module, pad/transpose/tile the static parameters (wt, bias) once
    # at init time instead of on every forward call; skipped here when already aligned.
    if (b_pad, k_pad) != (b, d_in):
        x2 = jnp.pad(x2, ((0, (b_pad - b) * r), (0, k_pad - d_in)))
        norm_x = jnp.pad(norm_x, ((0, b_pad - b), (0, k_pad - d_in)))
    if (k_pad, n_pad) != (d_in, d_out):
        wt = jnp.pad(wt, ((0, k_pad - d_in), (0, n_pad - d_out)))
    if n_pad != d_out:
        bias2d = jnp.pad(bias2d, ((0, 0), (0, n_pad - d_out)))
    # Pre-tile the bias so flattened row j (= local_b*r + rot) gets bias[j % r] with a
    # plain dense add in the kernel.
    bias_t = jnp.tile(bias2d, (block_b, 1))                            # (block_b*r, n_pad)

    grid = (b_pad // block_b, n_pad // block_n, k_pad // block_k)

    grid_spec = pltpu.PrefetchScalarGridSpec(
        num_scalar_prefetch=0,
        grid=grid,
        in_specs=[
            pl.BlockSpec((block_b * r, block_k), lambda i, j, k: (i, k)),   # x (flat)
            pl.BlockSpec((block_b, block_k), lambda i, j, k: (i, k)),       # norm_x
            pl.BlockSpec((block_k, block_n), lambda i, j, k: (k, j)),       # W^T
            pl.BlockSpec((block_b * r, block_n), lambda i, j, k: (0, j)),   # bias
        ],
        out_specs=[
            pl.BlockSpec((block_b * r, block_n), lambda i, j, k: (i, j)),   # phi (flat)
            pl.BlockSpec((block_b, block_n), lambda i, j, k: (i, j)),       # m_bind
        ],
        scratch_shapes=[
            pltpu.VMEM((block_b * r, block_n), jnp.float32),
            pltpu.VMEM((block_b, block_n), jnp.float32),
        ],
    )

    cparams = dict(dimension_semantics=("parallel", "parallel", "arbitrary"))
    vmem_limit = _vmem_limit_bytes()
    if vmem_limit is not None:
        cparams["vmem_limit_bytes"] = vmem_limit

    phi_flat, m = pl.pallas_call(
        _rotating_linear_kernel,
        out_shape=(jax.ShapeDtypeStruct((b_pad * r, n_pad), out_dtype),
                   jax.ShapeDtypeStruct((b_pad, n_pad), out_dtype)),
        grid_spec=grid_spec,
        compiler_params=pltpu.CompilerParams(**cparams),
    )(x2, norm_x, wt, bias_t)

    phi = phi_flat[:b * r, :d_out].reshape(b, r, d_out)   # free reshape back to (b,r,n)
    m = m[:b, :d_out]
    return m, phi


# ---------------- pure-JAX reference for validation ----------------

def _reference(x, weight, rotation_bias):
    norm_x = jnp.sqrt(jnp.sum(x * x, axis=1))
    fw = jnp.einsum('brk,nk->brn', x, weight, precision=lax.Precision.HIGHEST)
    phi = fw + rotation_bias
    chi = jnp.einsum('bk,nk->bn', norm_x, weight, precision=lax.Precision.HIGHEST)
    norm_phi = jnp.sqrt(jnp.sum(phi * phi, axis=1))
    m_bind = 0.5 * norm_phi + 0.5 * chi
    return m_bind, phi


if __name__ == "__main__":
    root = jax.random.PRNGKey(0)

    def run_case(case_id, b, r, d_in, d_out, **tiles):
        k1, k2, k3 = jax.random.split(jax.random.fold_in(root, case_id), 3)
        bound = 1.0 / math.sqrt(d_in)
        x = jax.random.normal(k1, (b, r, d_in), jnp.float32)
        weight = jax.random.uniform(k2, (d_out, d_in), jnp.float32, -bound, bound)
        rotation_bias = jax.random.uniform(k3, (1, r, d_out), jnp.float32, -bound, bound)

        fwd = jax.jit(functools.partial(rotating_linear_forward, **tiles))
        m, phi = fwd(x, weight, rotation_bias)
        jax.block_until_ready((m, phi))

        m_ref, phi_ref = _reference(x, weight, rotation_bias)
        assert phi.shape == (b, r, d_out), phi.shape
        assert m.shape == (b, d_out), m.shape
        # Kernel matmuls run at default MXU precision with f32 accumulation; the
        # reference uses HIGHEST, so allow ~1e-3-class tolerance.
        assert jnp.allclose(phi, phi_ref, atol=2e-3, rtol=2e-3), \
            float(jnp.max(jnp.abs(phi - phi_ref)))
        assert jnp.allclose(m, m_ref, atol=2e-3, rtol=2e-3), \
            float(jnp.max(jnp.abs(m - m_ref)))

    # Small shape consistent with the module (batch=2, d_rotating=4, hidden=32).
    run_case(1, b=2, r=4, d_in=32, d_out=32)
    # Auto-tiled medium shape (exercises the parallel-axis split heuristic for v7x).
    run_case(2, b=16, r=4, d_in=256, d_out=256)
    # Explicit tiles exercising batch / d_out / d_in-reduction accumulation paths.
    run_case(3, b=16, r=4, d_in=256, d_out=256, block_b=8, block_n=128, block_k=128)

    print("KERNEL_OK")
</pallas_src>

<mosaic_0001>
module attributes {stable_mosaic.version = 11 : i64} {
  func.func @_rotating_linear_kernel(%arg0: i32, %arg1: i32, %arg2: i32, %arg3: memref<8x32xf32, #tpu.memory_space<vmem>>, %arg4: memref<2x32xf32, #tpu.memory_space<vmem>>, %arg5: memref<32x32xf32, #tpu.memory_space<vmem>>, %arg6: memref<8x32xf32, #tpu.memory_space<vmem>>, %arg7: memref<8x32xf32, #tpu.memory_space<vmem>>, %arg8: memref<2x32xf32, #tpu.memory_space<vmem>>, %arg9: memref<8x32xf32, #tpu.memory_space<vmem>>, %arg10: memref<2x32xf32, #tpu.memory_space<vmem>>) attributes {dimension_semantics = [#tpu.dimension_semantics<parallel>, #tpu.dimension_semantics<parallel>, #tpu.dimension_semantics<arbitrary>], iteration_bounds = array<i64: 1, 1, 1>, scalar_prefetch = 0 : i64, scratch_operands = 2 : i64, tpu.core_type = #tpu.core_type<tc>, window_params = [{transform_indices = @transform_0, window_bounds = array<i64: 8, 32>}, {transform_indices = @transform_1, window_bounds = array<i64: 2, 32>}, {transform_indices = @transform_2, window_bounds = array<i64: 32, 32>}, {transform_indices = @transform_3, window_bounds = array<i64: 8, 32>}, {transform_indices = @transform_4, window_bounds = array<i64: 8, 32>}, {transform_indices = @transform_5, window_bounds = array<i64: 2, 32>}]} {
    %c0_i32 = arith.constant 0 : i32
    %0 = arith.cmpi eq, %arg2, %c0_i32 : i32
    %1 = arith.extui %0 : i1 to i32
    %c0_i32_0 = arith.constant 0 : i32
    %2 = arith.cmpi ne, %1, %c0_i32_0 : i32
    scf.if %2 {
      %cst_17 = arith.constant 0.000000e+00 : f32
      %17 = vector.broadcast %cst_17 : f32 to vector<8x32xf32>
      %c0_18 = arith.constant 0 : index
      %c0_19 = arith.constant 0 : index
      %18 = vector.load %arg9[%c0_18, %c0_19] : memref<8x32xf32, #tpu.memory_space<vmem>>, vector<8x32xf32>
      tpu.vector_store %arg9[%c0_18, %c0_19], %17 {strides = array<i32>} : memref<8x32xf32, #tpu.memory_space<vmem>>, vector<8x32xf32>,
      %cst_20 = arith.constant 0.000000e+00 : f32
      %19 = vector.broadcast %cst_20 : f32 to vector<2x32xf32>
      %c0_21 = arith.constant 0 : index
      %c0_22 = arith.constant 0 : index
      %20 = vector.load %arg10[%c0_21, %c0_22] : memref<2x32xf32, #tpu.memory_space<vmem>>, vector<2x32xf32>
      tpu.vector_store %arg10[%c0_21, %c0_22], %19 {strides = array<i32>} : memref<2x32xf32, #tpu.memory_space<vmem>>, vector<2x32xf32>,
    } else {
    }
    %c0 = arith.constant 0 : index
    %c0_1 = arith.constant 0 : index
    %3 = vector.load %arg5[%c0, %c0_1] : memref<32x32xf32, #tpu.memory_space<vmem>>, vector<32x32xf32>
    %c0_2 = arith.constant 0 : index
    %c0_3 = arith.constant 0 : index
    %4 = vector.load %arg9[%c0_2, %c0_3] : memref<8x32xf32, #tpu.memory_space<vmem>>, vector<8x32xf32>
    %c0_4 = arith.constant 0 : index
    %c0_5 = arith.constant 0 : index
    %5 = vector.load %arg3[%c0_4, %c0_5] : memref<8x32xf32, #tpu.memory_space<vmem>>, vector<8x32xf32>
    %cst = arith.constant dense<0.000000e+00> : vector<8x32xf32>
    %6 = tpu.matmul %5, %3, %cst {dimension_numbers = #tpu.dot_dimension_numbers<[1], [0], [0], [1], [0, 0, 1, 1], [], []>} : vector<8x32xf32>, vector<32x32xf32>, vector<8x32xf32> -> vector<8x32xf32>
    %7 = arith.addf %4, %6 : vector<8x32xf32>
    %c0_6 = arith.constant 0 : index
    %c0_7 = arith.constant 0 : index
    %8 = vector.load %arg9[%c0_6, %c0_7] : memref<8x32xf32, #tpu.memory_space<vmem>>, vector<8x32xf32>
    tpu.vector_store %arg9[%c0_6, %c0_7], %7 {strides = array<i32>} : memref<8x32xf32, #tpu.memory_space<vmem>>, vector<8x32xf32>,
    %c0_8 = arith.constant 0 : index
    %c0_9 = arith.constant 0 : index
    %9 = vector.load %arg10[%c0_8, %c0_9] : memref<2x32xf32, #tpu.memory_space<vmem>>, vector<2x32xf32>
    %c0_10 = arith.constant 0 : index
    %c0_11 = arith.constant 0 : index
    %10 = vector.load %arg4[%c0_10, %c0_11] : memref<2x32xf32, #tpu.memory_space<vmem>>, vector<2x32xf32>
    %cst_12 = arith.constant dense<0.000000e+00> : vector<2x32xf32>
    %11 = tpu.matmul %10, %3, %cst_12 {dimension_numbers = #tpu.dot_dimension_numbers<[1], [0], [0], [1], [0, 0, 1, 1], [], []>} : vector<2x32xf32>, vector<32x32xf32>, vector<2x32xf32> -> vector<2x32xf32>
    %12 = arith.addf %9, %11 : vector<2x32xf32>
    %c0_13 = arith.constant 0 : index
    %c0_14 = arith.constant 0 : index
    %13 = vector.load %arg10[%c0_13, %c0_14] : memref<2x32xf32, #tpu.memory_space<vmem>>, vector<2x32xf32>
    tpu.vector_store %arg10[%c0_13, %c0_14], %12 {strides = array<i32>} : memref<2x32xf32, #tpu.memory_space<vmem>>, vector<2x32xf32>,
    %c0_i32_15 = arith.constant 0 : i32
    %14 = arith.cmpi eq, %arg2, %c0_i32_15 : i32
    %15 = arith.extui %14 : i1 to i32
    %c0_i32_16 = arith.constant 0 : i32
    %16 = arith.cmpi ne, %15, %c0_i32_16 : i32
    scf.if %16 {
      %c0_17 = arith.constant 0 : index
      %c0_18 = arith.constant 0 : index
      %17 = vector.load %arg9[%c0_17, %c0_18] : memref<8x32xf32, #tpu.memory_space<vmem>>, vector<8x32xf32>
      %c0_19 = arith.constant 0 : index
      %c0_20 = arith.constant 0 : index
      %18 = vector.load %arg6[%c0_19, %c0_20] : memref<8x32xf32, #tpu.memory_space<vmem>>, vector<8x32xf32>
      %19 = arith.addf %17, %18 : vector<8x32xf32>
      %c0_21 = arith.constant 0 : index
      %c0_22 = arith.constant 0 : index
      %20 = vector.load %arg7[%c0_21, %c0_22] : memref<8x32xf32, #tpu.memory_space<vmem>>, vector<8x32xf32>
      tpu.vector_store %arg7[%c0_21, %c0_22], %19 {strides = array<i32>} : memref<8x32xf32, #tpu.memory_space<vmem>>, vector<8x32xf32>,
      %c0_23 = arith.constant 0 : index
      %c0_24 = arith.constant 0 : index
      %21 = vector.load %arg9[%c0_23, %c0_24] : memref<8x32xf32, #tpu.memory_space<vmem>>, vector<8x32xf32>
      tpu.vector_store %arg9[%c0_23, %c0_24], %19 {strides = array<i32>} : memref<8x32xf32, #tpu.memory_space<vmem>>, vector<8x32xf32>,
      %c0_25 = arith.constant 0 : index
      %c0_26 = arith.constant 0 : index
      %22 = tpu.strided_load %arg9[%c0_25, %c0_26] {strides = array<i32: 4, 1>} : memref<8x32xf32, #tpu.memory_space<vmem>>, vector<2x32xf32>
      %23 = arith.mulf %22, %22 : vector<2x32xf32>
      %c1 = arith.constant 1 : index
      %c0_27 = arith.constant 0 : index
      %24 = tpu.strided_load %arg9[%c1, %c0_27] {strides = array<i32: 4, 1>} : memref<8x32xf32, #tpu.memory_space<vmem>>, vector<2x32xf32>
      %25 = arith.mulf %24, %24 : vector<2x32xf32>
      %26 = arith.addf %23, %25 : vector<2x32xf32>
      %c2 = arith.constant 2 : index
      %c0_28 = arith.constant 0 : index
      %27 = tpu.strided_load %arg9[%c2, %c0_28] {strides = array<i32: 4, 1>} : memref<8x32xf32, #tpu.memory_space<vmem>>, vector<2x32xf32>
      %28 = arith.mulf %27, %27 : vector<2x32xf32>
      %29 = arith.addf %26, %28 : vector<2x32xf32>
      %c3 = arith.constant 3 : index
      %c0_29 = arith.constant 0 : index
      %30 = tpu.strided_load %arg9[%c3, %c0_29] {strides = array<i32: 4, 1>} : memref<8x32xf32, #tpu.memory_space<vmem>>, vector<2x32xf32>
      %31 = arith.mulf %30, %30 : vector<2x32xf32>
      %32 = arith.addf %29, %31 : vector<2x32xf32>
      %33 = math.sqrt %32 : vector<2x32xf32>
      %cst_30 = arith.constant 5.000000e-01 : f32
      %34 = vector.broadcast %cst_30 : f32 to vector<2x32xf32>
      %35 = arith.mulf %34, %33 : vector<2x32xf32>
      %c0_31 = arith.constant 0 : index
      %c0_32 = arith.constant 0 : index
      %36 = vector.load %arg10[%c0_31, %c0_32] : memref<2x32xf32, #tpu.memory_space<vmem>>, vector<2x32xf32>
      %cst_33 = arith.constant 5.000000e-01 : f32
      %37 = vector.broadcast %cst_33 : f32 to vector<2x32xf32>
      %38 = arith.mulf %37, %36 : vector<2x32xf32>
      %39 = arith.addf %35, %38 : vector<2x32xf32>
      %c0_34 = arith.constant 0 : index
      %c0_35 = arith.constant 0 : index
      %40 = vector.load %arg8[%c0_34, %c0_35] : memref<2x32xf32, #tpu.memory_space<vmem>>, vector<2x32xf32>
      tpu.vector_store %arg8[%c0_34, %c0_35], %39 {strides = array<i32>} : memref<2x32xf32, #tpu.memory_space<vmem>>, vector<2x32xf32>,
    } else {
    }
    return
  }
  func.func @transform_0(%arg0: i32, %arg1: i32, %arg2: i32) -> (i32, i32) {
    %c0_i32 = arith.constant 0 : i32
    return %arg0, %arg2 : i32, i32
  }
  func.func @transform_1(%arg0: i32, %arg1: i32, %arg2: i32) -> (i32, i32) {
    %c0_i32 = arith.constant 0 : i32
    return %arg0, %arg2 : i32, i32
  }
  func.func @transform_2(%arg0: i32, %arg1: i32, %arg2: i32) -> (i32, i32) {
    %c0_i32 = arith.constant 0 : i32
    return %arg2, %arg1 : i32, i32
  }
  func.func @transform_3(%arg0: i32, %arg1: i32, %arg2: i32) -> (i32, i32) {
    %c0_i32 = arith.constant 0 : i32
    %c0_i32_0 = arith.constant 0 : i32
    return %c0_i32, %arg1 : i32, i32
  }
  func.func @transform_4(%arg0: i32, %arg1: i32, %arg2: i32) -> (i32, i32) {
    %c0_i32 = arith.constant 0 : i32
    return %arg0, %arg1 : i32, i32
  }
  func.func @transform_5(%arg0: i32, %arg1: i32, %arg2: i32) -> (i32, i32) {
    %c0_i32 = arith.constant 0 : i32
    return %arg0, %arg1 : i32, i32
  }
}

</mosaic_0001>

<bundles_post_ra>
// kernel: rotating_linear_forward.1
= control target key start
LH: loop header
LB: loop body
LE: loop exit
PB: predicated region body
PF: predicated region fallthrough
CT: control target
= control target key end

     0   :  { %11 = vsyncpa [#allocation5], 0  ;;  %vm25_vm0 = vcmask 261120   ;;  %v335_v1 = vmov 0.0   ;;  %vm336_vm1 = vmmov 0   ;;  %s407_s0 = inlined_call_operand.vmem [shape: f32[8,32], index: 0, kind: input, shape index: {}]   ;;  %s408_s1 = inlined_call_operand.vmem [shape: f32[2,32], index: 1, kind: input, shape index: {}]   ;;  %s409_s2 = inlined_call_operand.vmem [shape: f32[32,32], index: 2, kind: input, shape index: {}]   ;;  %s410_s3 = inlined_call_operand.vmem [shape: f32[8,32], index: 3, kind: input, shape index: {}]   ;;  %s411_s4 = inlined_call_operand.hbm [shape: f32[8,32], index: 4, kind: output, shape index: {0}]   ;;  %s412_s5 = inlined_call_operand.hbm [shape: f32[2,32], index: 5, kind: output, shape index: {1}]  }
   0x1   :  { %v32_v0 = vld [vmem:[%s409_s2 + $0x18] sm:$0xff]  ;;  %263 = vmatprep.subr.mxu0 %v335_v1  ;;  %v31_v2 = vld [vmem:[%s409_s2 + $0x10] sm:$0xff]  ;;  %271 = vmatprep.mubr.msk.f32.mxu0 %vm336_vm1, %v335_v1  ;;  %26 = vst.msk [vmem:[#allocation2] sm:$0xff] %vm25_vm0, %v335_v1 }
   0x2   :  { %264 = vmatpush3.msra.mxu0 %v32_v0  ;;  %274 = vmatprep.subr.mxu1 %v335_v1 }
   0x3   :  { %12 = vsyncpa [#allocation7], 0  ;;  %265 = vmatprep.subr.mxu0 %v335_v1  ;;  %v30_v3 = vld [vmem:[%s409_s2 + $0x8] sm:$0xff]  ;;  %275 = vmatpush3.msra.mxu1 %v32_v0  ;;  %v29_v4 = vld [vmem:[%s409_s2] sm:$0xff]  ;;  %vm27_vm2 = vcmask 254976   ;;  %s337_s2 = smov [#allocation4]  }
   0x4   :  { %266 = vmatpush3.msra.mxu0 %v31_v2  ;;  %276 = vmatprep.subr.mxu1 %v335_v1  ;;  %v34_v5 = vld [vmem:[%s407_s0] sm:$0xff]  ;;  %28 = vst.msk [vmem:[#allocation3] sm:$0x3] %vm27_vm2, %v335_v1  ;;  %s229_s30 = sshll.u32 %s337_s2, 4  ;;  %s230_s30 = int_to_ptr.vmem [resolvable:$true] %s229_s30 }
   0x5   :  { %267 = vmatprep.subr.mxu0 %v335_v1  ;;  %277 = vmatpush3.msra.mxu1 %v31_v2  ;;  %v112_v6 = vld [vmem:[%s408_s1] sm:$0x3]  ;;  %s291_s6 = scalar_lea.vmem %s230_s30, 128  ;;  %p296_p1 = scmp.lt.s32.totalorder %s230_s30, %s230_s30 }
   0x6   :  { %268 = vmatpush3.msra.mxu0 %v30_v3  ;;  %278 = vmatprep.subr.mxu1 %v335_v1  ;;  %v193_v15 = vld [vmem:[%s410_s3] sm:$0xff]  ;;  %p292_p0 = scmp.ne.s32.totalorder %s230_s30, %s291_s6  ;;  %p297_p2 = scmp.lt.s32.totalorder %s291_s6, %s291_s6 }
   0x7   :  { %269 = vmatprep.subr.mxu0 %v335_v1  ;;  %279 = vmatpush3.msra.mxu1 %v30_v3 }
   0x8   :  { %270 = vmatpush3.msra.mxu0 %v29_v4  ;;  %280 = vmatprep.subr.mxu1 %v335_v1  ;;  %v33_v7 = vld [vmem:[#allocation2] sm:$0xff]  ;;  %p298_p3 = por %p297_p2, %p296_p1 }
   0x9   :  { %272 = vmatmul.mubr.msk.f32.vlgmr.msra.gmra.mxu0 %vm25_vm0, %v34_v5  ;;  %281 = vmatpush3.msra.mxu1 %v29_v4 }
   0xa   :  { %282 = vmatprep.mubr.msk.f32.mxu1 %vm336_vm1, %v335_v1  ;;  %p299_p4 = pnand %p298_p3, %p292_p0 }
   0xb   :  { %283 = vmatmul.mubr.msk.f32.vlgmr.msra.gmra.mxu1 %vm25_vm0, %v112_v6  ;;  %v111_v9 = vld [vmem:[#allocation3] sm:$0x3] }
  0xc9   :  { %v105_v8 = vpop.f32.mrf.mxu0 }
  0xca   :  { %v109_v10 = vadd.f32 %v105_v8, %v33_v7 }
  0xcb   :  { %v273_v11 = vpop.f32.mrf.mxu0  ;;  %v182_v12 = vpop.f32.mrf.mxu1 }
  0xcc   :  { %110 = vst.msk [vmem:[#allocation2] sm:$0xff] %vm25_vm0, %v109_v10  ;;  %v186_v13 = vadd.f32 %v182_v12, %v111_v9 }
  0xcd   :  { %v284_v14 = vpop.f32.mrf.mxu1 }
  0xce   :  { %188 = vst.msk [vmem:[#allocation3] sm:$0x3] %vm27_vm2, %v186_v13 }
  0xd3   :  { %v192_v16 = vld [vmem:[#allocation2] sm:$0xff] }
  0xd4   :  { %v194_v17 = vadd.f32 %v193_v15, %v192_v16 }
  0xd6   :  { %195 = vst.msk [vmem:[#allocation4] sm:$0xff] %vm25_vm0, %v194_v17  ;;  %196 = vst.msk [vmem:[#allocation2] sm:$0xff] %vm25_vm0, %v194_v17 }
  0xd7   :  { %302 = shalt.err (!%p299_p4)
}
  0xd8   :  { %232 = dma.vmem_to_hbm [thread:$0]  %s230_s30, 128, %s411_s4, [#allocation5]   ;;  %v219_v30 = vld [vmem:[#allocation3] sm:$0x3] }
  0xd9   :  { %v220_v34 = vmul.f32 0.5, %v219_v30  ;;  %s338_s3 = smov [#allocation6]  }
  0xda   :  { %s239_s4 = sshll.u32 %s338_s3, 4  ;;  %s240_s4 = int_to_ptr.vmem [resolvable:$true] %s239_s4 }
  0xdb   :  { %s311_s9 = scalar_lea.vmem %s240_s4, 32  ;;  %p316_p6 = scmp.lt.s32.totalorder %s240_s4, %s240_s4 }
  0xdc   :  { %p312_p5 = scmp.ne.s32.totalorder %s240_s4, %s311_s9  ;;  %p317_p7 = scmp.lt.s32.totalorder %s311_s9, %s311_s9 }
  0xdd   :  { %v197_v18 = vld [vmem:[#allocation2] ss:$4 sm:$0x3]  ;;  %v200_v19 = vld [vmem:[#allocation2 + $0x1] ss:$4 sm:$0x3] }
  0xde   :  { %v198_v20 = vmul.f32 %v197_v18, %v197_v18  ;;  %v201_v21 = vmul.f32 %v200_v19, %v200_v19  ;;  %v204_v22 = vld [vmem:[#allocation2 + $0x2] ss:$4 sm:$0x3]  ;;  %v208_v23 = vld [vmem:[#allocation2 + $0x3] ss:$4 sm:$0x3]  ;;  %p318_p8 = por %p317_p7, %p316_p6 }
  0xdf   :  { %v205_v25 = vmul.f32 %v204_v22, %v204_v22  ;;  %v209_v27 = vmul.f32 %v208_v23, %v208_v23 }
  0xe0   :  { %v202_v24 = vadd.f32 %v201_v21, %v198_v20  ;;  %p319_p9 = pnand %p318_p8, %p312_p5 }
  0xe2   :  { %v206_v26 = vadd.f32 %v205_v25, %v202_v24 }
  0xe4   :  { %v210_v28 = vadd.f32 %v209_v27, %v206_v26 }
  0xe6   :  { %289 = vrsqrt.f32 %v210_v28  ;;  %vm213_vm3 = vcmp.eq.f32.partialorder %v210_v28, inf  ;;  %v216_v32 = vand.u32 2147483648, %v210_v28  ;;  %vm215_vm4 = vcmp.eq.f32.partialorder %v210_v28, 0.0 }
  0xf3   :  { %v290_v29 = vpop.eup %289 }
  0xf4   :  { %v212_v31 = vmul.f32 %v290_v29, %v210_v28 }
  0xf6   :  { %v214_v33 = vsel %vm213_vm3, %v210_v28, %v212_v31 }
  0xf7   :  { %v217_v35 = vsel %vm215_vm4, %v216_v32, %v214_v33 }
  0xf8   :  { %v218_v36 = vmul.f32 0.5, %v217_v35 }
  0xfa   :  { %v221_v37 = vadd.f32 %v220_v34, %v218_v36 }
  0xfc   :  { %222 = vst.msk [vmem:[#allocation6] sm:$0x3] %vm27_vm2, %v221_v37 }
  0xfd   :  { %322 = shalt.err (!%p319_p9)
}
  0xfe   :  { %242 = dma.vmem_to_hbm [thread:$0]  %s240_s4, 32, %s412_s5, [#allocation7]  }
  0xff   :  { %331 = dma.done.wait [#allocation5], 128  }
 0x100   :  { %332 = vsyncadd [#allocation5], 4294967168 }
 0x101   :  { %333 = dma.done.wait [#allocation7], 32  }
 0x102   :  { %334 = vsyncadd [#allocation7], 4294967264 }
 0x103   :  { %249 = vsyncpa [#allocation5], 1 }
 0x104   :  { %250 = vsyncpa [#allocation7], 1 }

</bundles_post_ra>
